<compile_context>
chip_gen: v5e
topology: v5e:2x2
jax: 0.10.0
libtpu: 0.0.40
codegen_flags: <defaults>
</compile_context>

<pallas_src>
import functools
import math

import jax
import jax.numpy as jnp
from jax.experimental import pallas as pl
from jax.experimental.pallas import tpu as pltpu


def _softsign_f32(x):
    # torch.nn.Softsign: x / (1 + |x|); divide offloaded to the EUP.
    return x * pl.reciprocal(1.0 + jnp.abs(x), approx=True)


def _softsign_bf16(x):
    # x is bf16: abs/add/mul stay bf16 (half the VALU vregs); the reciprocal is
    # kept in f32 because Mosaic's EUP reciprocal lowering is f32-only.
    denom = (1.0 + jnp.abs(x)).astype(jnp.float32)
    return x * pl.reciprocal(denom, approx=True).astype(jnp.bfloat16)


def actuator_net_kernel(x_ref,
                        w1_ref,
                        w2_ref, b2_ref,
                        w3_ref, b3_ref,
                        w4_ref, b4_ref,
                        out_ref, *, bf16_elementwise):
    """One batch tile (batch on lanes) of the fused MLP forward pass."""
    x = x_ref[...].astype(jnp.bfloat16)                        # (in_pad, Btile)

    # Layer 1: bias folded into w1 via the constant-1 input row.
    h = jnp.dot(w1_ref[...], x, preferred_element_type=jnp.float32)

    if bf16_elementwise:                                        # v6e / v7x path
        h = _softsign_bf16(h.astype(jnp.bfloat16))
        h = jnp.dot(w2_ref[...], h,
                    preferred_element_type=jnp.float32) + b2_ref[...]
        h = _softsign_bf16(h.astype(jnp.bfloat16))
        h = jnp.dot(w3_ref[...], h,
                    preferred_element_type=jnp.float32) + b3_ref[...]
        h = _softsign_bf16(h.astype(jnp.bfloat16))
        y = jnp.dot(w4_ref[...], h,
                    preferred_element_type=jnp.float32) + b4_ref[...]
    else:                                                       # v5e path (f32 VALU/EUP)
        h = _softsign_f32(h)
        h = jnp.dot(w2_ref[...], h.astype(jnp.bfloat16),
                    preferred_element_type=jnp.float32) + b2_ref[...]
        h = _softsign_f32(h)
        h = jnp.dot(w3_ref[...], h.astype(jnp.bfloat16),
                    preferred_element_type=jnp.float32) + b3_ref[...]
        h = _softsign_f32(h)
        y = jnp.dot(w4_ref[...], h.astype(jnp.bfloat16),
                    preferred_element_type=jnp.float32) + b4_ref[...]

    out_ref[...] = y.astype(out_ref.dtype)                      # (out_dim, Btile)


def _choose_tiling(B, max_batch_tile):
    """Pick (tile, n_steps): tile as large as possible (<= max_batch_tile) with
    an even number of grid steps for megacore balance; single step for tiny B."""
    assert max_batch_tile % 128 == 0 and max_batch_tile >= 128
    B128 = max(128, math.ceil(B / 128) * 128)
    if B128 <= 256:
        return B128, 1
    n_steps = max(2, 2 * math.ceil(B128 / (2 * max_batch_tile)))
    tile = math.ceil(B128 / n_steps / 128) * 128
    return tile, n_steps


def _bf16_elementwise_ok():
    """bf16 VALU/EUP exists on v6e/v7x; keep f32 elementwise on v5e and older."""
    kind = jax.devices()[0].device_kind.lower()
    old = ("v2", "v3", "v4", "v5 lite", "v5lite", "v5e")
    return not any(tag in kind for tag in old)


@functools.partial(jax.jit, static_argnames=("max_batch_tile", "bf16_elementwise"))
def actuator_net_forward(x, params, *, max_batch_tile=8192, bf16_elementwise=True):
    """x: (B, input_dim) float32.  params: PyTorch-style w{1..4}:(out,in), b{1..4}:(out,)."""
    B, in_dim = x.shape
    h1 = params["w1"].shape[0]
    h2 = params["w2"].shape[0]
    h3 = params["w3"].shape[0]
    out_dim = params["w4"].shape[0]

    # Feature rows: in_dim real rows + 1 constant-1 row (bias fold), padded to
    # a sublane multiple (6 + 1 -> 8).
    in_pad = ((in_dim + 1 + 7) // 8) * 8

    tile, n_steps = _choose_tiling(B, max_batch_tile)
    B_pad = tile * n_steps

    # Lane-dense orientation: batch on lanes -> x_t is (in_pad, B_pad).
    # TODO(synk): for very large batches, have the producer emit x already in
    # (features, batch) layout so this pad+transpose isn't an extra HBM pass.
    x_t = jnp.zeros((in_pad, B_pad), jnp.float32)
    x_t = x_t.at[:in_dim, :B].set(x.T)
    x_t = x_t.at[in_dim, :].set(1.0)          # constant-1 row -> folds b1 into w1

    # Weights: bf16 for the MXU (f32 accumulate in-kernel); b1 folded into w1.
    w1 = jnp.zeros((h1, in_pad), jnp.float32)
    w1 = w1.at[:, :in_dim].set(params["w1"]).at[:, in_dim].set(params["b1"])
    w1 = w1.astype(jnp.bfloat16)
    w2 = params["w2"].astype(jnp.bfloat16)
    w3 = params["w3"].astype(jnp.bfloat16)
    w4 = params["w4"].astype(jnp.bfloat16)
    b2 = params["b2"].reshape(h2, 1).astype(jnp.float32)
    b3 = params["b3"].reshape(h3, 1).astype(jnp.float32)
    b4 = params["b4"].reshape(out_dim, 1).astype(jnp.float32)

    grid = (n_steps,)

    def weight_spec(shape):
        # Full-array block with a constant index_map: VMEM-resident across steps.
        return pl.BlockSpec(shape, lambda i: (0, 0))

    in_specs = [
        pl.BlockSpec((in_pad, tile), lambda i: (0, i)),   # x tile (batch on lanes)
        weight_spec(w1.shape),
        weight_spec(w2.shape), weight_spec(b2.shape),
        weight_spec(w3.shape), weight_spec(b3.shape),
        weight_spec(w4.shape), weight_spec(b4.shape),
    ]
    out_specs = pl.BlockSpec((out_dim, tile), lambda i: (0, i))

    # Advisory cost hint so XLA schedules the kernel well vs. the wrapper ops.
    flops = 2 * B_pad * (in_pad * h1 + h1 * h2 + h2 * h3 + h3 * out_dim)
    transcendentals = B_pad * (h1 + h2 + h3)          # one reciprocal / softsign elem
    bytes_accessed = (x_t.size * 4 + B_pad * out_dim * 4
                      + (w1.size + w2.size + w3.size + w4.size) * 2
                      + (b2.size + b3.size + b4.size) * 4)
    cost = pl.CostEstimate(flops=int(flops),
                           transcendentals=int(transcendentals),
                           bytes_accessed=int(bytes_accessed))

    kernel = functools.partial(actuator_net_kernel,
                               bf16_elementwise=bf16_elementwise)

    y_t = pl.pallas_call(
        kernel,
        out_shape=jax.ShapeDtypeStruct((out_dim, B_pad), jnp.float32),
        grid_spec=pltpu.PrefetchScalarGridSpec(
            num_scalar_prefetch=0,
            grid=grid,
            in_specs=in_specs,
            out_specs=out_specs,
        ),
        compiler_params=pltpu.CompilerParams(
            dimension_semantics=("parallel",)),
        cost_estimate=cost,
    )(x_t, w1, w2, b2, w3, b3, w4, b4)

    # Back to (B, out_dim), dropping batch padding.
    return y_t[:, :B].T


def init_actuator_net_params(key, input_dim=6, output_dim=1,
                             hidden_dims=(32, 32, 32)):
    """Deterministic init mimicking PyTorch's default Linear init:
    U(-1/sqrt(fan_in), 1/sqrt(fan_in)) for both weight and bias.
    Weights stored PyTorch-style as (out_features, in_features)."""
    dims = [input_dim, *hidden_dims, output_dim]
    params = {}
    for li in range(len(dims) - 1):
        fan_in, fan_out = dims[li], dims[li + 1]
        key, kw, kb = jax.random.split(key, 3)
        bound = 1.0 / jnp.sqrt(jnp.float32(fan_in))
        params[f"w{li + 1}"] = jax.random.uniform(
            kw, (fan_out, fan_in), jnp.float32, -bound, bound)
        params[f"b{li + 1}"] = jax.random.uniform(
            kb, (fan_out,), jnp.float32, -bound, bound)
    return params


def actuator_net_reference(x, params):
    """Pure-JAX f32 reference for correctness checking."""
    h = x
    for li in range(1, 4):
        h = h @ params[f"w{li}"].T + params[f"b{li}"]
        h = h / (1.0 + jnp.abs(h))
    return h @ params["w4"].T + params["b4"]


if __name__ == "__main__":
    key = jax.random.PRNGKey(0)
    kp, kx = jax.random.split(key)

    params = init_actuator_net_params(kp, input_dim=6, output_dim=1,
                                      hidden_dims=(32, 32, 32))

    # Non-multiple-of-tile batch: exercises padding and produces an even,
    # 2-step grid (one ~512-lane step per TensorCore on v7x).
    batch = 1000
    x = jax.random.normal(kx, (batch, 6), jnp.float32)

    use_bf16_act = _bf16_elementwise_ok()   # f32 elementwise on v5e and older
    y = actuator_net_forward(x, params, max_batch_tile=8192,
                             bf16_elementwise=use_bf16_act)
    y = jax.block_until_ready(y)

    y_ref = actuator_net_reference(x, params)
    assert y.shape == (batch, 1), y.shape
    # bf16 weights (+ bf16 softsign on v6e/v7x) and the approx EUP reciprocal
    # are intentional precision trade-offs -> loose tolerance.
    assert jnp.allclose(y, y_ref, atol=3e-2, rtol=3e-2), (
        float(jnp.max(jnp.abs(y - y_ref))))

    print("KERNEL_OK")
</pallas_src>

<mosaic_0001>
module attributes {stable_mosaic.version = 11 : i64} {
  func.func @actuator_net_kernel(%arg0: i32, %arg1: memref<8x512xf32, #tpu.memory_space<vmem>>, %arg2: memref<32x8xbf16, #tpu.memory_space<vmem>>, %arg3: memref<32x32xbf16, #tpu.memory_space<vmem>>, %arg4: memref<32x1xf32, #tpu.memory_space<vmem>>, %arg5: memref<32x32xbf16, #tpu.memory_space<vmem>>, %arg6: memref<32x1xf32, #tpu.memory_space<vmem>>, %arg7: memref<1x32xbf16, #tpu.memory_space<vmem>>, %arg8: memref<1x1xf32, #tpu.memory_space<vmem>>, %arg9: memref<1x512xf32, #tpu.memory_space<vmem>>) attributes {dimension_semantics = [#tpu.dimension_semantics<parallel>], iteration_bounds = array<i64: 2>, scalar_prefetch = 0 : i64, scratch_operands = 0 : i64, tpu.core_type = #tpu.core_type<tc>, window_params = [{transform_indices = @transform_0, window_bounds = array<i64: 8, 512>}, {pipeline_mode = #tpu.pipeline_mode<synchronous>, transform_indices = @transform_1, window_bounds = array<i64: 32, 8>}, {pipeline_mode = #tpu.pipeline_mode<synchronous>, transform_indices = @transform_2, window_bounds = array<i64: 32, 32>}, {pipeline_mode = #tpu.pipeline_mode<synchronous>, transform_indices = @transform_3, window_bounds = array<i64: 32, 1>}, {pipeline_mode = #tpu.pipeline_mode<synchronous>, transform_indices = @transform_4, window_bounds = array<i64: 32, 32>}, {pipeline_mode = #tpu.pipeline_mode<synchronous>, transform_indices = @transform_5, window_bounds = array<i64: 32, 1>}, {pipeline_mode = #tpu.pipeline_mode<synchronous>, transform_indices = @transform_6, window_bounds = array<i64: 1, 32>}, {pipeline_mode = #tpu.pipeline_mode<synchronous>, transform_indices = @transform_7, window_bounds = array<i64: 1, 1>}, {transform_indices = @transform_8, window_bounds = array<i64: 1, 512>}]} {
    %c0 = arith.constant 0 : index
    %c0_0 = arith.constant 0 : index
    %0 = vector.load %arg1[%c0, %c0_0] : memref<8x512xf32, #tpu.memory_space<vmem>>, vector<8x512xf32>
    %1 = arith.truncf %0 : vector<8x512xf32> to vector<8x512xbf16>
    %c0_1 = arith.constant 0 : index
    %c0_2 = arith.constant 0 : index
    %2 = vector.load %arg2[%c0_1, %c0_2] : memref<32x8xbf16, #tpu.memory_space<vmem>>, vector<32x8xbf16>
    %cst = arith.constant dense<0.000000e+00> : vector<32x512xf32>
    %3 = tpu.matmul %2, %1, %cst {dimension_numbers = #tpu.dot_dimension_numbers<[1], [0], [0], [1], [0, 0, 1, 1], [], []>} : vector<32x8xbf16>, vector<8x512xbf16>, vector<32x512xf32> -> vector<32x512xf32>
    %4 = arith.truncf %3 : vector<32x512xf32> to vector<32x512xbf16>
    %5 = math.absf %4 : vector<32x512xbf16>
    %cst_3 = arith.constant 1.000000e+00 : bf16
    %6 = vector.broadcast %cst_3 : bf16 to vector<32x512xbf16>
    %7 = arith.addf %6, %5 : vector<32x512xbf16>
    %8 = arith.extf %7 : vector<32x512xbf16> to vector<32x512xf32>
    %9 = tpu.reciprocal %8 {approx = true} : vector<32x512xf32> -> vector<32x512xf32>
    %10 = arith.truncf %9 : vector<32x512xf32> to vector<32x512xbf16>
    %11 = arith.mulf %4, %10 : vector<32x512xbf16>
    %c0_4 = arith.constant 0 : index
    %c0_5 = arith.constant 0 : index
    %12 = vector.load %arg3[%c0_4, %c0_5] : memref<32x32xbf16, #tpu.memory_space<vmem>>, vector<32x32xbf16>
    %cst_6 = arith.constant dense<0.000000e+00> : vector<32x512xf32>
    %13 = tpu.matmul %12, %11, %cst_6 {dimension_numbers = #tpu.dot_dimension_numbers<[1], [0], [0], [1], [0, 0, 1, 1], [], []>} : vector<32x32xbf16>, vector<32x512xbf16>, vector<32x512xf32> -> vector<32x512xf32>
    %c0_7 = arith.constant 0 : index
    %c0_8 = arith.constant 0 : index
    %14 = vector.load %arg4[%c0_7, %c0_8] : memref<32x1xf32, #tpu.memory_space<vmem>>, vector<32x1xf32>
    %15 = vector.broadcast %14 : vector<32x1xf32> to vector<32x512xf32>
    %16 = arith.addf %13, %15 : vector<32x512xf32>
    %17 = arith.truncf %16 : vector<32x512xf32> to vector<32x512xbf16>
    %18 = math.absf %17 : vector<32x512xbf16>
    %cst_9 = arith.constant 1.000000e+00 : bf16
    %19 = vector.broadcast %cst_9 : bf16 to vector<32x512xbf16>
    %20 = arith.addf %19, %18 : vector<32x512xbf16>
    %21 = arith.extf %20 : vector<32x512xbf16> to vector<32x512xf32>
    %22 = tpu.reciprocal %21 {approx = true} : vector<32x512xf32> -> vector<32x512xf32>
    %23 = arith.truncf %22 : vector<32x512xf32> to vector<32x512xbf16>
    %24 = arith.mulf %17, %23 : vector<32x512xbf16>
    %c0_10 = arith.constant 0 : index
    %c0_11 = arith.constant 0 : index
    %25 = vector.load %arg5[%c0_10, %c0_11] : memref<32x32xbf16, #tpu.memory_space<vmem>>, vector<32x32xbf16>
    %cst_12 = arith.constant dense<0.000000e+00> : vector<32x512xf32>
    %26 = tpu.matmul %25, %24, %cst_12 {dimension_numbers = #tpu.dot_dimension_numbers<[1], [0], [0], [1], [0, 0, 1, 1], [], []>} : vector<32x32xbf16>, vector<32x512xbf16>, vector<32x512xf32> -> vector<32x512xf32>
    %c0_13 = arith.constant 0 : index
    %c0_14 = arith.constant 0 : index
    %27 = vector.load %arg6[%c0_13, %c0_14] : memref<32x1xf32, #tpu.memory_space<vmem>>, vector<32x1xf32>
    %28 = vector.broadcast %27 : vector<32x1xf32> to vector<32x512xf32>
    %29 = arith.addf %26, %28 : vector<32x512xf32>
    %30 = arith.truncf %29 : vector<32x512xf32> to vector<32x512xbf16>
    %31 = math.absf %30 : vector<32x512xbf16>
    %cst_15 = arith.constant 1.000000e+00 : bf16
    %32 = vector.broadcast %cst_15 : bf16 to vector<32x512xbf16>
    %33 = arith.addf %32, %31 : vector<32x512xbf16>
    %34 = arith.extf %33 : vector<32x512xbf16> to vector<32x512xf32>
    %35 = tpu.reciprocal %34 {approx = true} : vector<32x512xf32> -> vector<32x512xf32>
    %36 = arith.truncf %35 : vector<32x512xf32> to vector<32x512xbf16>
    %37 = arith.mulf %30, %36 : vector<32x512xbf16>
    %c0_16 = arith.constant 0 : index
    %c0_17 = arith.constant 0 : index
    %38 = vector.load %arg7[%c0_16, %c0_17] : memref<1x32xbf16, #tpu.memory_space<vmem>>, vector<1x32xbf16>
    %cst_18 = arith.constant dense<0.000000e+00> : vector<1x512xf32>
    %39 = tpu.matmul %38, %37, %cst_18 {dimension_numbers = #tpu.dot_dimension_numbers<[1], [0], [0], [1], [0, 0, 1, 1], [], []>} : vector<1x32xbf16>, vector<32x512xbf16>, vector<1x512xf32> -> vector<1x512xf32>
    %c0_19 = arith.constant 0 : index
    %c0_20 = arith.constant 0 : index
    %40 = vector.load %arg8[%c0_19, %c0_20] : memref<1x1xf32, #tpu.memory_space<vmem>>, vector<1x1xf32>
    %41 = vector.broadcast %40 : vector<1x1xf32> to vector<1x512xf32>
    %42 = arith.addf %39, %41 : vector<1x512xf32>
    %c0_21 = arith.constant 0 : index
    %c0_22 = arith.constant 0 : index
    %43 = vector.load %arg9[%c0_21, %c0_22] : memref<1x512xf32, #tpu.memory_space<vmem>>, vector<1x512xf32>
    tpu.vector_store %arg9[%c0_21, %c0_22], %42 {strides = array<i32>} : memref<1x512xf32, #tpu.memory_space<vmem>>, vector<1x512xf32>,
    return
  }
  func.func @transform_0(%arg0: i32) -> (i32, i32) {
    %c0_i32 = arith.constant 0 : i32
    %c0_i32_0 = arith.constant 0 : i32
    return %c0_i32, %arg0 : i32, i32
  }
  func.func @transform_1(%arg0: i32) -> (i32, i32) {
    %c0_i32 = arith.constant 0 : i32
    %c0_i32_0 = arith.constant 0 : i32
    %c0_i32_1 = arith.constant 0 : i32
    return %c0_i32, %c0_i32_0 : i32, i32
  }
  func.func @transform_2(%arg0: i32) -> (i32, i32) {
    %c0_i32 = arith.constant 0 : i32
    %c0_i32_0 = arith.constant 0 : i32
    %c0_i32_1 = arith.constant 0 : i32
    return %c0_i32, %c0_i32_0 : i32, i32
  }
  func.func @transform_3(%arg0: i32) -> (i32, i32) {
    %c0_i32 = arith.constant 0 : i32
    %c0_i32_0 = arith.constant 0 : i32
    %c0_i32_1 = arith.constant 0 : i32
    return %c0_i32, %c0_i32_0 : i32, i32
  }
  func.func @transform_4(%arg0: i32) -> (i32, i32) {
    %c0_i32 = arith.constant 0 : i32
    %c0_i32_0 = arith.constant 0 : i32
    %c0_i32_1 = arith.constant 0 : i32
    return %c0_i32, %c0_i32_0 : i32, i32
  }
  func.func @transform_5(%arg0: i32) -> (i32, i32) {
    %c0_i32 = arith.constant 0 : i32
    %c0_i32_0 = arith.constant 0 : i32
    %c0_i32_1 = arith.constant 0 : i32
    return %c0_i32, %c0_i32_0 : i32, i32
  }
  func.func @transform_6(%arg0: i32) -> (i32, i32) {
    %c0_i32 = arith.constant 0 : i32
    %c0_i32_0 = arith.constant 0 : i32
    %c0_i32_1 = arith.constant 0 : i32
    return %c0_i32, %c0_i32_0 : i32, i32
  }
  func.func @transform_7(%arg0: i32) -> (i32, i32) {
    %c0_i32 = arith.constant 0 : i32
    %c0_i32_0 = arith.constant 0 : i32
    %c0_i32_1 = arith.constant 0 : i32
    return %c0_i32, %c0_i32_0 : i32, i32
  }
  func.func @transform_8(%arg0: i32) -> (i32, i32) {
    %c0_i32 = arith.constant 0 : i32
    %c0_i32_0 = arith.constant 0 : i32
    return %c0_i32, %arg0 : i32, i32
  }
}

</mosaic_0001>

<bundles_post_ra>
// kernel: actuator_net_forward.1
= control target key start
LH: loop header
LB: loop body
LE: loop exit
PB: predicated region body
PF: predicated region fallthrough
CT: control target
= control target key end

     0   :  { %s1490_s29 = smov 0   ;;  %s1720_s0 = inlined_call_operand.vmem [shape: f32[8,1024], index: 0, kind: input, shape index: {}]   ;;  %s1721_s1 = inlined_call_operand.vmem [shape: bf16[32,8], index: 1, kind: input, shape index: {}]   ;;  %s1722_s2 = inlined_call_operand.vmem [shape: bf16[32,32], index: 2, kind: input, shape index: {}]   ;;  %s1723_s3 = inlined_call_operand.vmem [shape: f32[32,1], index: 3, kind: input, shape index: {}]   ;;  %s1724_s4 = inlined_call_operand.vmem [shape: bf16[32,32], index: 4, kind: input, shape index: {}]   ;;  %s1725_s5 = inlined_call_operand.vmem [shape: f32[32,1], index: 5, kind: input, shape index: {}]   ;;  %s1726_s6 = inlined_call_operand.vmem [shape: bf16[1,32], index: 6, kind: input, shape index: {}]   ;;  %s1727_s7 = inlined_call_operand.<no memory space> [shape: f32[1,1], index: 7, kind: input, shape index: {}]   ;;  %s1728_s8 = inlined_call_operand.vmem [shape: f32[1,1024], index: 8, kind: output, shape index: {}]  }
   0x1   :  { %v13_v0 = vstv %s1727_s7 }
   0x2   :  { %14 = vst [vmem:[#allocation2] sm:$0x1] %v13_v0 }
   0x3 LB: > { %s1257_s30 = sadd.s32 4294967295, %s1439_s29   ;;  %p1261_p0 = scmp.ge.s32.totalorder %s1439_s29, 1  ;;  %s1439_s29 = sphi %s1490_s29, %s20_s29  }
   0x4   : > { %p265_p1 = scmp.lt.s32.totalorder %s1439_s29, 3 }
   0x6   : > { %p266_p2 = pnand %p1261_p0, %p265_p1 }
   0x7   : > { %s1262_s9 = sshll.u32 (!%p266_p2), %s1257_s30, 2 }
   0x8   : > { %269 = sbr.rel (%p266_p2) target bundleno = 741 (0x2e5), region = 52  ;;  %p299_p3 = scmp.lt.s32.totalorder (!%p266_p2), %s1262_s9, 7 }
   0xd   : > { %s1730_s9 = smov (!%p299_p3, %s1262_s9), 7  ;;  %vm339_vm0 = vcmask 1043456   ;;  %v1319_v12 = vld [vmem:[%s1721_s1] sm:$0xff]  ;;  %vm332_vm1 = vcmask 64512   ;;  %v1320_v14 = vld [vmem:[%s1721_s1 + $0x8] sm:$0xff]  ;;  %vm618_vm2 = vcmask 261120  }
   0xe   : > { %s1263_s7 = sshll.u32 %s1730_s9, 3  ;;  %vm1195_vm3 = vcmask 1040384   ;;  %vm1197_vm4 = vcmask 1042434   ;;  %vm1199_vm5 = vcmask 1041408   ;;  %s307_s24 = scalar_lea.vmem %s1728_s8, %s1730_s9 }
   0xf   : > { %s302_s12 = scalar_lea.vmem %s1720_s0, %s1263_s7 }
  0x10   : > { %v310_v1 = vld [vmem:[%s302_s12] sm:$0xff]  ;;  %v311_v2 = vld [vmem:[%s302_s12 + $0x8] sm:$0xff]  ;;  %v312_v3 = vld [vmem:[%s302_s12 + $0x10] sm:$0xff] }
  0x11   : > { %v314_v4 = vpack.c.bf16 %v310_v1, %v310_v1  ;;  %v315_v5 = vpack.c.bf16 %v311_v2, %v311_v2  ;;  %v316_v6 = vpack.c.bf16 %v312_v3, %v312_v3  ;;  %v313_v7 = vld [vmem:[%s302_s12 + $0x18] sm:$0xff] }
  0x12   : > { %v317_v8 = vpack.c.bf16 %v313_v7, %v313_v7 }
  0x13   : > { %v341_v9 = vsel %vm339_vm0, %v314_v4, 0  ;;  %v344_v10 = vsel %vm339_vm0, %v315_v5, 0  ;;  %v347_v11 = vsel %vm339_vm0, %v316_v6, 0 }
  0x14   : > { %359 = vmatpush.bf16.msra.mxu0 %v341_v9  ;;  %378 = vmatpush.bf16.msra.mxu1 %v344_v10  ;;  %v350_v13 = vsel %vm339_vm0, %v317_v8, 0 }
  0x15   : > { %397 = vmatpush.bf16.msra.mxu2 %v347_v11  ;;  %416 = vmatpush.bf16.msra.mxu3 %v350_v13 }
  0x17   : > { %1273 = vmatmul.msk.bf16.vlgmr.msra.gmra.mxu0 %vm332_vm1, %v1319_v12  ;;  %1275 = vmatmul.msk.bf16.vlgmr.msra.gmra.mxu1 %vm332_vm1, %v1319_v12 }
  0x18   : > { %1277 = vmatmul.msk.bf16.vlgmr.msra.gmra.mxu2 %vm332_vm1, %v1319_v12  ;;  %1279 = vmatmul.msk.bf16.vlgmr.msra.gmra.mxu3 %vm332_vm1, %v1319_v12 }
  0x27   : > { %1274 = vmatmul.msk.bf16.gmra.mxu0 %vm332_vm1, %v1320_v14  ;;  %1276 = vmatmul.msk.bf16.gmra.mxu1 %vm332_vm1, %v1320_v14 }
  0x28   : > { %1278 = vmatmul.msk.bf16.gmra.mxu2 %vm332_vm1, %v1320_v14  ;;  %1280 = vmatmul.msk.bf16.gmra.mxu3 %vm332_vm1, %v1320_v14 }
  0x94   : > { %v361_v15 = vpop.f32.mrf.mxu0  ;;  %v380_v16 = vpop.f32.mrf.mxu1 }
  0x95   : > { %v1510_v17 = vpack.c.bf16 %v380_v16, %v361_v15 }
  0x97   : > { %v436_v18 = vand.u32 2147450879, %v1510_v17 }
  0x99   : > { %v444_v24 = vunpack.c.l.bf16 %v436_v18  ;;  %v445_v25 = vunpack.c.h.bf16 %v436_v18 }
  0x9b   : > { %v399_v19 = vpop.f32.mrf.mxu2  ;;  %v418_v20 = vpop.f32.mrf.mxu3  ;;  %v460_v27 = vadd.f32 1.0, %v444_v24  ;;  %v461_v28 = vadd.f32 1.0, %v445_v25 }
  0x9c   : > { %v363_v21 = vpop.f32.mrf.mxu0  ;;  %v382_v22 = vpop.f32.mrf.mxu1  ;;  %v1516_v33 = vpack.c.bf16 %v418_v20, %v399_v19 }
  0x9d   : > { %v1513_v23 = vpack.c.bf16 %v382_v22, %v363_v21  ;;  %v476_v38 = vpack.c.bf16 %v461_v28, %v460_v27 }
  0x9e   : > { %v437_v43 = vand.u32 2147450879, %v1516_v33 }
  0x9f   : > { %v438_v26 = vand.u32 2147450879, %v1513_v23  ;;  %v484_v48 = vunpack.c.l.bf16 %v476_v38  ;;  %v485_v63 = vunpack.c.h.bf16 %v476_v38 }
  0xa0   : > { %v446_v56 = vunpack.c.l.bf16 %v437_v43  ;;  %v447_v60 = vunpack.c.h.bf16 %v437_v43 }
  0xa1   : > { %v448_v29 = vunpack.c.l.bf16 %v438_v26  ;;  %v449_v30 = vunpack.c.h.bf16 %v438_v26  ;;  %1337 = vrcp.f32 %v484_v48  ;;  %v584_v48 = vld [vmem:[%s1723_s3] sm:$0xff] }
  0xa2   : > { %v462_v4 = vadd.f32 1.0, %v446_v56  ;;  %v463_v8 = vadd.f32 1.0, %v447_v60  ;;  %1339 = vrcp.f32 %v485_v63  ;;  %v524_v56 = vunpack.c.l.bf16 %v1510_v17 }
  0xa3   : > { %v401_v31 = vpop.f32.mrf.mxu2  ;;  %v420_v32 = vpop.f32.mrf.mxu3  ;;  %v464_v39 = vadd.f32 1.0, %v448_v29  ;;  %v465_v40 = vadd.f32 1.0, %v449_v30  ;;  %v528_v63 = vunpack.c.l.bf16 %v1513_v23 }
  0xa4   : > { %v1518_v34 = vpack.c.bf16 %v420_v32, %v401_v31  ;;  %v366_v35 = vpop.f32.mrf.mxu0  ;;  %v385_v36 = vpop.f32.mrf.mxu1  ;;  %v477_v25 = vpack.c.bf16 %v463_v8, %v462_v4 }
  0xa5   : > { %v1520_v37 = vpack.c.bf16 %v385_v36, %v366_v35  ;;  %v478_v49 = vpack.c.bf16 %v465_v40, %v464_v39 }
  0xa6   : > { %v439_v41 = vand.u32 2147450879, %v1518_v34  ;;  %v486_v40 = vunpack.c.l.bf16 %v477_v25 }
  0xa7   : > { %v440_v42 = vand.u32 2147450879, %v1520_v37  ;;  %v488_v1 = vunpack.c.l.bf16 %v478_v49  ;;  %v489_v12 = vunpack.c.h.bf16 %v478_v49  ;;  %v1338_v24 = vpop.eup %1337  ;;  %v532_v4 = vunpack.c.l.bf16 %v1520_v37 }
  0xa8   : > { %v450_v44 = vunpack.c.l.bf16 %v439_v41  ;;  %v451_v45 = vunpack.c.h.bf16 %v439_v41  ;;  %v1340_v32 = vpop.eup %1339 }
  0xa9   : > { %v452_v46 = vunpack.c.l.bf16 %v440_v42  ;;  %v453_v47 = vunpack.c.h.bf16 %v440_v42  ;;  %1341 = vrcp.f32 %v488_v1  ;;  %v487_v42 = vunpack.c.h.bf16 %v477_v25 }
  0xaa   : > { %v466_v50 = vadd.f32 1.0, %v450_v44  ;;  %v467_v51 = vadd.f32 1.0, %v451_v45 }
  0xab   : > { %v468_v52 = vadd.f32 1.0, %v452_v46  ;;  %v469_v53 = vadd.f32 1.0, %v453_v47  ;;  %v404_v54 = vpop.f32.mrf.mxu2  ;;  %v423_v55 = vpop.f32.mrf.mxu3 }
  0xac   : > { %v1525_v57 = vpack.c.bf16 %v423_v55, %v404_v54  ;;  %v368_v58 = vpop.f32.mrf.mxu0  ;;  %v387_v59 = vpop.f32.mrf.mxu1  ;;  %v479_v2 = vpack.c.bf16 %v467_v51, %v466_v50  ;;  %v1441_v54 = vmov 0  }
  0xad   : > { %v480_v61 = vpack.c.bf16 %v469_v53, %v468_v52  ;;  %v1527_v62 = vpack.c.bf16 %v387_v59, %v368_v58  ;;  %1335 = vset.pattern.permute.xlu1 %v1441_v54  ;;  %1334 = vset.pattern.permute.xlu0 %v1441_v54  ;;  %v516_v58 = vpack.c.bf16 %v1340_v32, %v1338_v24 }
  0xae   : > { %v441_v0 = vand.u32 2147450879, %v1525_v57  ;;  %v490_v15 = vunpack.c.l.bf16 %v479_v2  ;;  %v491_v35 = vunpack.c.h.bf16 %v479_v2  ;;  %590 = vperm.xlu1 %1335, %v584_v48   ;;  %1336 = vset.pattern.permute.xlu2 %v1441_v54  ;;  %v530_v2 = vunpack.c.l.bf16 %v1518_v34 }
  0xaf   : > { %v442_v3 = vand.u32 2147450879, %v1527_v62  ;;  %v492_v5 = vunpack.c.l.bf16 %v480_v61  ;;  %v493_v9 = vunpack.c.h.bf16 %v480_v61  ;;  %v1342_v39 = vpop.eup %1341  ;;  %v525_v61 = vunpack.c.h.bf16 %v1510_v17 }
  0xb0   : > { %v454_v6 = vunpack.c.l.bf16 %v441_v0  ;;  %v455_v7 = vunpack.c.h.bf16 %v441_v0  ;;  %v529_v0 = vunpack.c.h.bf16 %v1513_v23 }
  0xb1   : > { %v456_v10 = vunpack.c.l.bf16 %v442_v3  ;;  %v457_v11 = vunpack.c.h.bf16 %v442_v3  ;;  %1343 = vrcp.f32 %v492_v5  ;;  %v531_v3 = vunpack.c.h.bf16 %v1518_v34  ;;  %v857_v34 = vld [vmem:[%s1725_s5] sm:$0xff] }
  0xb2   : > { %v470_v13 = vadd.f32 1.0, %v454_v6  ;;  %v471_v14 = vadd.f32 1.0, %v455_v7  ;;  %1345 = vrcp.f32 %v493_v9  ;;  %v533_v6 = vunpack.c.h.bf16 %v1520_v37 }
  0xb3   : > { %v472_v16 = vadd.f32 1.0, %v456_v10  ;;  %v473_v18 = vadd.f32 1.0, %v457_v11  ;;  %v406_v19 = vpop.f32.mrf.mxu2  ;;  %v425_v20 = vpop.f32.mrf.mxu3  ;;  %1347 = vrcp.f32 %v489_v12  ;;  %v540_v10 = vunpack.c.l.bf16 %v516_v58 }
  0xb4   : > { %v481_v21 = vpack.c.bf16 %v471_v14, %v470_v13  ;;  %v1531_v22 = vpack.c.bf16 %v425_v20, %v406_v19  ;;  %1349 = vrcp.f32 %v490_v15  ;;  %v536_v14 = vunpack.c.l.bf16 %v1527_v62  ;;  %v585_v19 = vld [vmem:[%s1723_s3 + $0x8] sm:$0xff] }
  0xb5   : > { %v482_v26 = vpack.c.bf16 %v473_v18, %v472_v16  ;;  %v537_v15 = vunpack.c.h.bf16 %v1527_v62  ;;  %v534_v37 = vunpack.c.l.bf16 %v1525_v57  ;;  %v535_v20 = vunpack.c.h.bf16 %v1525_v57 }
  0xb6   : > { %v494_v27 = vunpack.c.l.bf16 %v481_v21  ;;  %v495_v28 = vunpack.c.h.bf16 %v481_v21  ;;  %v443_v29 = vand.u32 2147450879, %v1531_v22  ;;  %v541_v21 = vunpack.c.h.bf16 %v516_v58  ;;  %595 = vperm.xlu1 %1335, %v585_v19  }
  0xb7   : > { %v496_v30 = vunpack.c.l.bf16 %v482_v26  ;;  %v497_v31 = vunpack.c.h.bf16 %v482_v26  ;;  %v1344_v41 = vpop.eup %1343 }
  0xb8   : > { %1351 = vrcp.f32 %v494_v27  ;;  %v458_v36 = vunpack.c.l.bf16 %v443_v29  ;;  %v459_v38 = vunpack.c.h.bf16 %v443_v29  ;;  %v1346_v45 = vpop.eup %1345 }
  0xb9   : > { %1353 = vrcp.f32 %v495_v28  ;;  %v1348_v46 = vpop.eup %1347  ;;  %v520_v53 = vpack.c.bf16 %v1346_v45, %v1344_v41  ;;  %v538_v41 = vunpack.c.l.bf16 %v1531_v22  ;;  %v539_v45 = vunpack.c.h.bf16 %v1531_v22 }
  0xba   : > { %1355 = vrcp.f32 %v496_v30  ;;  %v474_v43 = vadd.f32 1.0, %v458_v36  ;;  %v475_v44 = vadd.f32 1.0, %v459_v38  ;;  %v1350_v49 = vpop.eup %1349  ;;  %v518_v59 = vpack.c.bf16 %v1348_v46, %v1342_v39  ;;  %v586_v36 = vld [vmem:[%s1723_s3 + $0x10] sm:$0xff] }
  0xbb   : > { %1357 = vrcp.f32 %v497_v31  ;;  %v548_v8 = vunpack.c.l.bf16 %v520_v53  ;;  %v549_v9 = vunpack.c.h.bf16 %v520_v53  ;;  %600 = vperm.xlu0 %1334, %v586_v36   ;;  %v527_v22 = vunpack.c.h.bf16 %v1516_v33 }
  0xbc   : > { %1359 = vrcp.f32 %v491_v35  ;;  %v483_v47 = vpack.c.bf16 %v475_v44, %v474_v43  ;;  %v544_v11 = vunpack.c.l.bf16 %v518_v59  ;;  %v545_v12 = vunpack.c.h.bf16 %v518_v59 }
  0xbd   : > { %1361 = vrcp.f32 %v486_v40  ;;  %v564_v26 = vmul.f32 %v548_v8, %v532_v4  ;;  %v565_v28 = vmul.f32 %v549_v9, %v533_v6  ;;  %v557_v43 = vmul.f32 %v541_v21, %v525_v61  ;;  %v587_v4 = vld [vmem:[%s1723_s3 + $0x18] sm:$0xff] }
  0xbe   : > { %v1352_v50 = vpop.eup %1351  ;;  %1363 = vrcp.f32 %v487_v42  ;;  %v498_v51 = vunpack.c.l.bf16 %v483_v47  ;;  %v499_v52 = vunpack.c.h.bf16 %v483_v47  ;;  %v560_v31 = vmul.f32 %v544_v11, %v528_v63 }
  0xbf   : > { %v1354_v55 = vpop.eup %1353  ;;  %v561_v62 = vmul.f32 %v545_v12, %v529_v0  ;;  %v556_v42 = vmul.f32 %v540_v10, %v524_v56  ;;  %v858_v56 = vld [vmem:[%s1725_s5 + $0x8] sm:$0xff]  ;;  %v526_v59 = vunpack.c.l.bf16 %v1516_v33 }
  0xc0   : > { %v1356_v60 = vpop.eup %1355  ;;  %1365 = vrcp.f32 %v498_v51  ;;  %v521_v23 = vpack.c.bf16 %v1354_v55, %v1352_v50  ;;  %868 = vperm.xlu1 %1335, %v858_v56  }
  0xc1   : > { %v1358_v1 = vpop.eup %1357  ;;  %1367 = vrcp.f32 %v499_v52  ;;  %v573_v50 = vpack.c.bf16 %v561_v62, %v557_v43 }
  0xc2   : > { %v1360_v5 = vpop.eup %1359  ;;  %v522_v7 = vpack.c.bf16 %v1358_v1, %v1356_v60  ;;  %v550_v32 = vunpack.c.l.bf16 %v521_v23  ;;  %v551_v40 = vunpack.c.h.bf16 %v521_v23  ;;  %v1321_v60 = vld [vmem:[%s1722_s2] sm:$0xff] }
  0xc3   : > { %v1362_v17 = vpop.eup %1361  ;;  %v519_v24 = vpack.c.bf16 %v1360_v5, %v1350_v49  ;;  %v572_v49 = vpack.c.bf16 %v560_v31, %v556_v42  ;;  %605 = vperm.xlu0 %1334, %v587_v4  }
  0xc4   : > { %v1364_v13 = vpop.eup %1363  ;;  %v552_v16 = vunpack.c.l.bf16 %v522_v7  ;;  %v553_v18 = vunpack.c.h.bf16 %v522_v7  ;;  %v566_v53 = vmul.f32 %v550_v32, %v534_v37  ;;  %v567_v55 = vmul.f32 %v551_v40, %v535_v20 }
  0xc5   : > { %v517_v35 = vpack.c.bf16 %v1364_v13, %v1362_v17  ;;  %v546_v44 = vunpack.c.l.bf16 %v519_v24  ;;  %v547_v48 = vunpack.c.h.bf16 %v519_v24 }
  0xc6   : > { %v1366_v25 = vpop.eup %1365  ;;  %v568_v27 = vmul.f32 %v552_v16, %v536_v14  ;;  %v569_v29 = vmul.f32 %v553_v18, %v537_v15 }
  0xc7   : > { %v1368_v30 = vpop.eup %1367  ;;  %v542_v51 = vunpack.c.l.bf16 %v517_v35  ;;  %v543_v52 = vunpack.c.h.bf16 %v517_v35  ;;  %v562_v61 = vmul.f32 %v546_v44, %v530_v2  ;;  %v563_v1 = vmul.f32 %v547_v48, %v531_v3  ;;  %v1322_v3 = vld [vmem:[%s1722_s2 + $0x8] sm:$0xff] }
  0xc8   : > { %v576_v38 = vpack.c.bf16 %v568_v27, %v564_v26  ;;  %v577_v39 = vpack.c.bf16 %v569_v29, %v565_v28  ;;  %v523_v57 = vpack.c.bf16 %v1368_v30, %v1366_v25 }
  0xc9   : > { %v558_v33 = vmul.f32 %v542_v51, %v526_v59  ;;  %v559_v5 = vmul.f32 %v543_v52, %v527_v22 }
  0xca   : > { %631 = vmatpush.bf16.msrb.mxu0 %v576_v38  ;;  %650 = vmatpush.bf16.msrb.mxu1 %v577_v39  ;;  %v554_v46 = vunpack.c.l.bf16 %v523_v57  ;;  %v555_v47 = vunpack.c.h.bf16 %v523_v57 }
  0xcb   : > { %v574_v2 = vpack.c.bf16 %v562_v61, %v558_v33  ;;  %v575_v6 = vpack.c.bf16 %v563_v1, %v559_v5  ;;  %863 = vperm.xlu0 %1334, %v857_v34  }
  0xcc   : > { %v570_v54 = vmul.f32 %v554_v46, %v538_v41  ;;  %v571_v58 = vmul.f32 %v555_v47, %v539_v45 }
  0xce   : > { %632 = vmatpush.bf16.msrb.mxu0 %v572_v49  ;;  %651 = vmatpush.bf16.msrb.mxu1 %v573_v50  ;;  %v578_v63 = vpack.c.bf16 %v570_v54, %v566_v53  ;;  %v579_v0 = vpack.c.bf16 %v571_v58, %v567_v55 }
  0xd0   : > { %669 = vmatpush.bf16.msrb.mxu2 %v578_v63  ;;  %688 = vmatpush.bf16.msrb.mxu3 %v579_v0 }
  0xd1   : > { %1289 = vmatmul.msk.bf16.vlgmr.msrb.gmra.mxu0 %vm618_vm2, %v1321_v60  ;;  %1291 = vmatmul.msk.bf16.vlgmr.msrb.gmra.mxu1 %vm618_vm2, %v1321_v60 }
  0xd4   : > { %670 = vmatpush.bf16.msrb.mxu2 %v574_v2  ;;  %689 = vmatpush.bf16.msrb.mxu3 %v575_v6 }
  0xd7   : > { %1293 = vmatmul.msk.bf16.vlgmr.msrb.gmra.mxu2 %vm618_vm2, %v1321_v60  ;;  %1295 = vmatmul.msk.bf16.vlgmr.msrb.gmra.mxu3 %vm618_vm2, %v1321_v60 }
  0xe1   : > { %1290 = vmatmul.msk.bf16.gmra.mxu0 %vm618_vm2, %v1322_v3  ;;  %1292 = vmatmul.msk.bf16.gmra.mxu1 %vm618_vm2, %v1322_v3 }
  0xe7   : > { %1294 = vmatmul.msk.bf16.gmra.mxu2 %vm618_vm2, %v1322_v3  ;;  %1296 = vmatmul.msk.bf16.gmra.mxu3 %vm618_vm2, %v1322_v3 }
 0x120   : > { %v591_v7 = vpop.permute.xlu1 %590 }
 0x128   : > { %v596_v12 = vpop.permute.xlu1 %595 }
 0x12d   : > { %v601_v25 = vpop.permute.xlu0 %600 }
 0x135   : > { %v606_v50 = vpop.permute.xlu0 %605 }
 0x14e   : > { %v634_v8 = vpop.f32.mrf.mxu0  ;;  %v653_v9 = vpop.f32.mrf.mxu1 }
 0x14f   : > { %v635_v17 = vadd.f32 %v634_v8, %v591_v7  ;;  %v654_v10 = vadd.f32 %v653_v9, %v591_v7 }
 0x151   : > { %v1586_v11 = vpack.c.bf16 %v654_v10, %v635_v17 }
 0x153   : > { %v709_v23 = vand.u32 2147450879, %v1586_v11 }
 0x155   : > { %v717_v19 = vunpack.c.l.bf16 %v709_v23  ;;  %v718_v37 = vunpack.c.h.bf16 %v709_v23 }
 0x156   : > { %v636_v13 = vpop.f32.mrf.mxu0  ;;  %v655_v14 = vpop.f32.mrf.mxu1 }
 0x157   : > { %v637_v15 = vadd.f32 %v636_v13, %v596_v12  ;;  %v656_v16 = vadd.f32 %v655_v14, %v596_v12  ;;  %v733_v30 = vadd.f32 1.0, %v717_v19  ;;  %v734_v31 = vadd.f32 1.0, %v718_v37 }
 0x159   : > { %v1589_v18 = vpack.c.bf16 %v656_v16, %v637_v15  ;;  %v749_v41 = vpack.c.bf16 %v734_v31, %v733_v30 }
 0x15a   : > { %v672_v20 = vpop.f32.mrf.mxu2  ;;  %v691_v21 = vpop.f32.mrf.mxu3 }
 0x15b   : > { %v711_v24 = vand.u32 2147450879, %v1589_v18  ;;  %v673_v26 = vadd.f32 %v672_v20, %v591_v7  ;;  %v692_v27 = vadd.f32 %v691_v21, %v591_v7  ;;  %v757_v52 = vunpack.c.l.bf16 %v749_v41 }
 0x15c   : > { %v758_v15 = vunpack.c.h.bf16 %v749_v41 }
 0x15d   : > { %v721_v28 = vunpack.c.l.bf16 %v711_v24  ;;  %v722_v29 = vunpack.c.h.bf16 %v711_v24  ;;  %v1592_v38 = vpack.c.bf16 %v692_v27, %v673_v26  ;;  %1369 = vrcp.f32 %v757_v52 }
 0x15e   : > { %v639_v62 = vpop.f32.mrf.mxu0  ;;  %v658_v32 = vpop.f32.mrf.mxu1  ;;  %v801_v52 = vunpack.c.l.bf16 %v1589_v18 }
 0x15f   : > { %v640_v35 = vadd.f32 %v639_v62, %v601_v25  ;;  %v659_v36 = vadd.f32 %v658_v32, %v601_v25  ;;  %v737_v39 = vadd.f32 1.0, %v721_v28  ;;  %v738_v57 = vadd.f32 1.0, %v722_v29 }
 0x160   : > { %v710_v45 = vand.u32 2147450879, %v1592_v38 }
 0x161   : > { %v1594_v40 = vpack.c.bf16 %v659_v36, %v640_v35  ;;  %v751_v47 = vpack.c.bf16 %v738_v57, %v737_v39 }
 0x162   : > { %v674_v42 = vpop.f32.mrf.mxu2  ;;  %v693_v43 = vpop.f32.mrf.mxu3  ;;  %v719_v22 = vunpack.c.l.bf16 %v710_v45  ;;  %v720_v63 = vunpack.c.h.bf16 %v710_v45 }
 0x163   : > { %v713_v44 = vand.u32 2147450879, %v1594_v40  ;;  %v675_v46 = vadd.f32 %v674_v42, %v596_v12  ;;  %v694_v51 = vadd.f32 %v693_v43, %v596_v12  ;;  %v761_v61 = vunpack.c.l.bf16 %v751_v47  ;;  %v1370_v37 = vpop.eup %1369 }
 0x164   : > { %v762_v6 = vunpack.c.h.bf16 %v751_v47  ;;  %v735_v34 = vadd.f32 1.0, %v719_v22  ;;  %v736_v8 = vadd.f32 1.0, %v720_v63 }
 0x165   : > { %v725_v48 = vunpack.c.l.bf16 %v713_v44  ;;  %v726_v49 = vunpack.c.h.bf16 %v713_v44  ;;  %v1598_v56 = vpack.c.bf16 %v694_v51, %v675_v46  ;;  %1371 = vrcp.f32 %v761_v61 }
 0x166   : > { %v641_v53 = vpop.f32.mrf.mxu0  ;;  %v660_v54 = vpop.f32.mrf.mxu1  ;;  %v750_v21 = vpack.c.bf16 %v736_v8, %v735_v34  ;;  %v805_v61 = vunpack.c.l.bf16 %v1594_v40 }
 0x167   : > { %v741_v55 = vadd.f32 1.0, %v725_v48  ;;  %v742_v58 = vadd.f32 1.0, %v726_v49  ;;  %v642_v59 = vadd.f32 %v641_v53, %v606_v50  ;;  %v661_v60 = vadd.f32 %v660_v54, %v606_v50 }
 0x168   : > { %v712_v1 = vand.u32 2147450879, %v1598_v56  ;;  %v759_v43 = vunpack.c.l.bf16 %v750_v21  ;;  %v760_v47 = vunpack.c.h.bf16 %v750_v21  ;;  %v797_v49 = vunpack.c.l.bf16 %v1586_v11 }
 0x169   : > { %v753_v0 = vpack.c.bf16 %v742_v58, %v741_v55  ;;  %v1601_v4 = vpack.c.bf16 %v661_v60, %v642_v59 }
 0x16a   : > { %v677_v33 = vpop.f32.mrf.mxu2  ;;  %v696_v5 = vpop.f32.mrf.mxu3  ;;  %v723_v10 = vunpack.c.l.bf16 %v712_v1  ;;  %v724_v12 = vunpack.c.h.bf16 %v712_v1 }
 0x16b   : > { %v765_v2 = vunpack.c.l.bf16 %v753_v0  ;;  %v766_v3 = vunpack.c.h.bf16 %v753_v0  ;;  %v715_v7 = vand.u32 2147450879, %v1601_v4  ;;  %v678_v9 = vadd.f32 %v677_v33, %v601_v25  ;;  %v1372_v29 = vpop.eup %1371 }
 0x16c   : > { %v697_v17 = vadd.f32 %v696_v5, %v601_v25  ;;  %v739_v24 = vadd.f32 1.0, %v723_v10  ;;  %v740_v26 = vadd.f32 1.0, %v724_v12  ;;  %v809_v34 = vunpack.c.l.bf16 %v1601_v4 }
 0x16d   : > { %v729_v23 = vunpack.c.l.bf16 %v715_v7  ;;  %v730_v13 = vunpack.c.h.bf16 %v715_v7  ;;  %1373 = vrcp.f32 %v765_v2 }
 0x16e   : > { %v1604_v14 = vpack.c.bf16 %v697_v17, %v678_v9  ;;  %1375 = vrcp.f32 %v766_v3  ;;  %v752_v44 = vpack.c.bf16 %v740_v26, %v739_v24  ;;  %v810_v17 = vunpack.c.h.bf16 %v1601_v4 }
 0x16f   : > { %v745_v16 = vadd.f32 1.0, %v729_v23  ;;  %v746_v19 = vadd.f32 1.0, %v730_v13  ;;  %1377 = vrcp.f32 %v762_v6 }
 0x170   : > { %v714_v20 = vand.u32 2147450879, %v1604_v14  ;;  %1379 = vrcp.f32 %v758_v15  ;;  %v763_v59 = vunpack.c.l.bf16 %v752_v44  ;;  %v764_v63 = vunpack.c.h.bf16 %v752_v44 }
 0x171   : > { %v755_v27 = vpack.c.bf16 %v746_v19, %v745_v16 }
 0x172   : > { %v679_v25 = vpop.f32.mrf.mxu2  ;;  %v698_v28 = vpop.f32.mrf.mxu3  ;;  %v727_v30 = vunpack.c.l.bf16 %v714_v20  ;;  %v728_v31 = vunpack.c.h.bf16 %v714_v20  ;;  %v802_v20 = vunpack.c.h.bf16 %v1589_v18 }
 0x173   : > { %v680_v62 = vadd.f32 %v679_v25, %v606_v50  ;;  %v699_v32 = vadd.f32 %v698_v28, %v606_v50  ;;  %v769_v35 = vunpack.c.l.bf16 %v755_v27  ;;  %v770_v36 = vunpack.c.h.bf16 %v755_v27  ;;  %v1374_v39 = vpop.eup %1373 }
 0x174   : > { %v743_v57 = vadd.f32 1.0, %v727_v30  ;;  %v744_v41 = vadd.f32 1.0, %v728_v31  ;;  %v1376_v42 = vpop.eup %1375  ;;  %v798_v50 = vunpack.c.h.bf16 %v1586_v11  ;;  %v806_v11 = vunpack.c.h.bf16 %v1594_v40 }
 0x175   : > { %1381 = vrcp.f32 %v769_v35  ;;  %v1607_v45 = vpack.c.bf16 %v699_v32, %v680_v62  ;;  %v1378_v46 = vpop.eup %1377  ;;  %v793_v53 = vpack.c.bf16 %v1376_v42, %v1374_v39 }
 0x176   : > { %1383 = vrcp.f32 %v770_v36  ;;  %v754_v48 = vpack.c.bf16 %v744_v41, %v743_v57  ;;  %v1380_v58 = vpop.eup %1379  ;;  %v791_v0 = vpack.c.bf16 %v1378_v46, %v1372_v29  ;;  %v1323_v46 = vld [vmem:[%s1724_s4] sm:$0xff] }
 0x177   : > { %v716_v51 = vand.u32 2147450879, %v1607_v45  ;;  %1385 = vrcp.f32 %v759_v43  ;;  %v821_v6 = vunpack.c.l.bf16 %v793_v53  ;;  %v789_v3 = vpack.c.bf16 %v1380_v58, %v1370_v37 }
 0x178   : > { %v767_v54 = vunpack.c.l.bf16 %v754_v48  ;;  %v768_v55 = vunpack.c.h.bf16 %v754_v48  ;;  %1387 = vrcp.f32 %v760_v47  ;;  %v822_v7 = vunpack.c.h.bf16 %v793_v53  ;;  %v859_v48 = vld [vmem:[%s1725_s5 + $0x10] sm:$0xff] }
 0x179   : > { %v731_v22 = vunpack.c.l.bf16 %v716_v51  ;;  %v732_v60 = vunpack.c.h.bf16 %v716_v51  ;;  %v817_v10 = vunpack.c.l.bf16 %v791_v0  ;;  %v818_v12 = vunpack.c.h.bf16 %v791_v0  ;;  %873 = vperm.xlu2 %1336, %v859_v48  }
 0x17a   : > { %1389 = vrcp.f32 %v767_v54  ;;  %v837_v21 = vmul.f32 %v821_v6, %v805_v61  ;;  %v813_v24 = vunpack.c.l.bf16 %v789_v3  ;;  %v814_v37 = vunpack.c.h.bf16 %v789_v3 }
 0x17b   : > { %v1382_v1 = vpop.eup %1381  ;;  %v747_v33 = vadd.f32 1.0, %v731_v22  ;;  %v748_v5 = vadd.f32 1.0, %v732_v60  ;;  %1391 = vrcp.f32 %v768_v55  ;;  %v838_v27 = vmul.f32 %v822_v7, %v806_v11 }
 0x17c   : > { %v1384_v2 = vpop.eup %1383  ;;  %1393 = vrcp.f32 %v763_v59  ;;  %v833_v62 = vmul.f32 %v817_v10, %v801_v52  ;;  %v834_v32 = vmul.f32 %v818_v12, %v802_v20  ;;  %v829_v18 = vmul.f32 %v813_v24, %v797_v49  ;;  %v1126_v12 = vld [vmem:[#allocation2] sm:$0x1]  ;;  %v869_v20 = vpop.permute.xlu1 %868 }
 0x17d   : > { %v795_v8 = vpack.c.bf16 %v1384_v2, %v1382_v1  ;;  %v756_v9 = vpack.c.bf16 %v748_v5, %v747_v33  ;;  %1395 = vrcp.f32 %v764_v63  ;;  %v1386_v23 = vpop.eup %1385  ;;  %v830_v39 = vmul.f32 %v814_v37, %v798_v50 }
 0x17e   : > { %v1388_v19 = vpop.eup %1387  ;;  %v845_v41 = vpack.c.bf16 %v833_v62, %v829_v18  ;;  %v807_v49 = vunpack.c.l.bf16 %v1604_v14  ;;  %v808_v50 = vunpack.c.h.bf16 %v1604_v14  ;;  %v811_v54 = vunpack.c.l.bf16 %v1607_v45 }
 0x17f   : > { %v825_v40 = vunpack.c.l.bf16 %v795_v8  ;;  %v826_v13 = vunpack.c.h.bf16 %v795_v8  ;;  %v771_v15 = vunpack.c.l.bf16 %v756_v9  ;;  %v772_v16 = vunpack.c.h.bf16 %v756_v9 }
 0x180   : > { %v1390_v26 = vpop.eup %1389  ;;  %v846_v42 = vpack.c.bf16 %v834_v32, %v830_v39  ;;  %v790_v47 = vpack.c.bf16 %v1388_v19, %v1386_v23  ;;  %v812_v55 = vunpack.c.h.bf16 %v1607_v45  ;;  %v803_v61 = vunpack.c.l.bf16 %v1598_v56  ;;  %v864_v23 = vpop.permute.xlu0 %863 }
 0x181   : > { %v841_v25 = vmul.f32 %v825_v40, %v809_v34  ;;  %v842_v28 = vmul.f32 %v826_v13, %v810_v17  ;;  %1397 = vrcp.f32 %v771_v15  ;;  %v1392_v29 = vpop.eup %1391  ;;  %v804_v63 = vunpack.c.h.bf16 %v1598_v56  ;;  %v860_v56 = vld [vmem:[%s1725_s5 + $0x18] sm:$0xff] }
 0x182   : > { %1399 = vrcp.f32 %v772_v16  ;;  %v1394_v4 = vpop.eup %1393  ;;  %v794_v36 = vpack.c.bf16 %v1392_v29, %v1390_v26  ;;  %v815_v0 = vunpack.c.l.bf16 %v790_v47  ;;  %v816_v1 = vunpack.c.h.bf16 %v790_v47  ;;  %878 = vperm.xlu2 %1336, %v860_v56  }
 0x183   : > { %v849_v30 = vpack.c.bf16 %v841_v25, %v837_v21  ;;  %v850_v31 = vpack.c.bf16 %v842_v28, %v838_v27  ;;  %v1396_v35 = vpop.eup %1395  ;;  %v799_v45 = vunpack.c.l.bf16 %v1592_v38  ;;  %v800_v2 = vunpack.c.h.bf16 %v1592_v38  ;;  %v1324_v38 = vld [vmem:[%s1724_s4 + $0x8] sm:$0xff] }
 0x184   : > { %v792_v43 = vpack.c.bf16 %v1396_v35, %v1394_v4  ;;  %v823_v51 = vunpack.c.l.bf16 %v794_v36  ;;  %v824_v52 = vunpack.c.h.bf16 %v794_v36 }
 0x185   : > { %903 = vmatpush.bf16.msra.mxu0 %v849_v30  ;;  %922 = vmatpush.bf16.msra.mxu1 %v850_v31  ;;  %v831_v8 = vmul.f32 %v815_v0, %v799_v45  ;;  %v832_v9 = vmul.f32 %v816_v1, %v800_v2 }
 0x186   : > { %v819_v22 = vunpack.c.l.bf16 %v792_v43  ;;  %v820_v60 = vunpack.c.h.bf16 %v792_v43  ;;  %v839_v14 = vmul.f32 %v823_v51, %v807_v49  ;;  %v840_v11 = vmul.f32 %v824_v52, %v808_v50 }
 0x187   : > { %v1398_v57 = vpop.eup %1397 }
 0x188   : > { %v1400_v44 = vpop.eup %1399  ;;  %v835_v3 = vmul.f32 %v819_v22, %v803_v61  ;;  %v836_v7 = vmul.f32 %v820_v60, %v804_v63 }
 0x189   : > { %v796_v53 = vpack.c.bf16 %v1400_v44, %v1398_v57  ;;  %904 = vmatpush.bf16.msra.mxu0 %v845_v41  ;;  %923 = vmatpush.bf16.msra.mxu1 %v846_v42 }
 0x18a   : > { %v847_v17 = vpack.c.bf16 %v835_v3, %v831_v8  ;;  %v848_v10 = vpack.c.bf16 %v836_v7, %v832_v9  ;;  %1129 = vperm.xlu2 %1336, %v1126_v12  }
 0x18b   : > { %v827_v58 = vunpack.c.l.bf16 %v796_v53  ;;  %v828_v59 = vunpack.c.h.bf16 %v796_v53 }
 0x18c   : > { %1305 = vmatmul.msk.bf16.vlgmr.msra.gmra.mxu0 %vm618_vm2, %v1323_v46  ;;  %1307 = vmatmul.msk.bf16.vlgmr.msra.gmra.mxu1 %vm618_vm2, %v1323_v46 }
 0x18d   : > { %v843_v33 = vmul.f32 %v827_v58, %v811_v54  ;;  %v844_v5 = vmul.f32 %v828_v59, %v812_v55 }
 0x18f   : > { %v851_v6 = vpack.c.bf16 %v843_v33, %v839_v14  ;;  %v852_v34 = vpack.c.bf16 %v844_v5, %v840_v11 }
 0x191   : > { %941 = vmatpush.bf16.msra.mxu2 %v851_v6  ;;  %960 = vmatpush.bf16.msra.mxu3 %v852_v34 }
 0x195   : > { %942 = vmatpush.bf16.msra.mxu2 %v847_v17  ;;  %961 = vmatpush.bf16.msra.mxu3 %v848_v10 }
 0x198   : > { %1309 = vmatmul.msk.bf16.vlgmr.msra.gmra.mxu2 %vm618_vm2, %v1323_v46  ;;  %1311 = vmatmul.msk.bf16.vlgmr.msra.gmra.mxu3 %vm618_vm2, %v1323_v46 }
 0x19c   : > { %1306 = vmatmul.msk.bf16.gmra.mxu0 %vm618_vm2, %v1324_v38  ;;  %1308 = vmatmul.msk.bf16.gmra.mxu1 %vm618_vm2, %v1324_v38 }
 0x1a8   : > { %1310 = vmatmul.msk.bf16.gmra.mxu2 %vm618_vm2, %v1324_v38  ;;  %1312 = vmatmul.msk.bf16.gmra.mxu3 %vm618_vm2, %v1324_v38 }
 0x1d3   : > { %v1651_v4 = vpop.permute.xlu2 %873 }
 0x1dc   : > { %v1659_v49 = vpop.permute.xlu2 %878 }
 0x209   : > { %v906_v40 = vpop.f32.mrf.mxu0  ;;  %v925_v13 = vpop.f32.mrf.mxu1 }
 0x20a   : > { %v907_v15 = vadd.f32 %v906_v40, %v864_v23  ;;  %v926_v16 = vadd.f32 %v925_v13, %v864_v23 }
 0x20c   : > { %v1646_v19 = vpack.c.bf16 %v926_v16, %v907_v15 }
 0x20e   : > { %v981_v21 = vand.u32 2147450879, %v1646_v19 }
 0x210   : > { %v989_v28 = vunpack.c.l.bf16 %v981_v21  ;;  %v990_v29 = vunpack.c.h.bf16 %v981_v21 }
 0x211   : > { %v908_v24 = vpop.f32.mrf.mxu0  ;;  %v927_v37 = vpop.f32.mrf.mxu1 }
 0x212   : > { %v909_v26 = vadd.f32 %v908_v24, %v869_v20  ;;  %v928_v27 = vadd.f32 %v927_v37, %v869_v20  ;;  %v1005_v32 = vadd.f32 1.0, %v989_v28  ;;  %v1006_v35 = vadd.f32 1.0, %v990_v29 }
 0x214   : > { %v1649_v25 = vpack.c.bf16 %v928_v27, %v909_v26  ;;  %v1021_v47 = vpack.c.bf16 %v1006_v35, %v1005_v32 }
 0x216   : > { %v983_v30 = vand.u32 2147450879, %v1649_v25  ;;  %v1029_v55 = vunpack.c.l.bf16 %v1021_v47  ;;  %v1030_v1 = vunpack.c.h.bf16 %v1021_v47 }
 0x218   : > { %v993_v31 = vunpack.c.l.bf16 %v983_v30  ;;  %v994_v62 = vunpack.c.h.bf16 %v983_v30  ;;  %1401 = vrcp.f32 %v1029_v55 }
 0x219   : > { %v911_v36 = vpop.f32.mrf.mxu0  ;;  %v930_v18 = vpop.f32.mrf.mxu1  ;;  %1403 = vrcp.f32 %v1030_v1 }
 0x21a   : > { %v912_v39 = vadd.f32 %v911_v36, %v1651_v4  ;;  %v931_v57 = vadd.f32 %v930_v18, %v1651_v4  ;;  %v1009_v41 = vadd.f32 1.0, %v993_v31  ;;  %v1010_v42 = vadd.f32 1.0, %v994_v62 }
 0x21b   : > { %v944_v43 = vpop.f32.mrf.mxu2  ;;  %v963_v44 = vpop.f32.mrf.mxu3 }
 0x21c   : > { %v1656_v46 = vpack.c.bf16 %v931_v57, %v912_v39  ;;  %v945_v48 = vadd.f32 %v944_v43, %v864_v23  ;;  %v964_v51 = vadd.f32 %v963_v44, %v864_v23  ;;  %v1023_v53 = vpack.c.bf16 %v1010_v42, %v1009_v41 }
 0x21d   : > { %v1069_v41 = vunpack.c.l.bf16 %v1646_v19 }
 0x21e   : > { %v985_v52 = vand.u32 2147450879, %v1656_v46  ;;  %v1661_v58 = vpack.c.bf16 %v964_v51, %v945_v48  ;;  %v1033_v14 = vunpack.c.l.bf16 %v1023_v53  ;;  %v1034_v34 = vunpack.c.h.bf16 %v1023_v53 }
 0x21f   : > { %v1073_v48 = vunpack.c.l.bf16 %v1649_v25  ;;  %v1074_v51 = vunpack.c.h.bf16 %v1649_v25 }
 0x220   : > { %v997_v50 = vunpack.c.l.bf16 %v985_v52  ;;  %v998_v54 = vunpack.c.h.bf16 %v985_v52  ;;  %v982_v3 = vand.u32 2147450879, %v1661_v58  ;;  %1405 = vrcp.f32 %v1033_v14 }
 0x221   : > { %v913_v59 = vpop.f32.mrf.mxu0  ;;  %v932_v22 = vpop.f32.mrf.mxu1  ;;  %1407 = vrcp.f32 %v1034_v34 }
 0x222   : > { %v1013_v60 = vadd.f32 1.0, %v997_v50  ;;  %v1014_v61 = vadd.f32 1.0, %v998_v54  ;;  %v914_v63 = vadd.f32 %v913_v59, %v1659_v49  ;;  %v933_v0 = vadd.f32 %v932_v22, %v1659_v49 }
 0x223   : > { %v946_v11 = vpop.f32.mrf.mxu2  ;;  %v965_v33 = vpop.f32.mrf.mxu3  ;;  %v991_v12 = vunpack.c.l.bf16 %v982_v3  ;;  %v992_v38 = vunpack.c.h.bf16 %v982_v3  ;;  %v1077_v59 = vunpack.c.l.bf16 %v1656_v46 }
 0x224   : > { %v1025_v5 = vpack.c.bf16 %v1014_v61, %v1013_v60  ;;  %v1665_v45 = vpack.c.bf16 %v933_v0, %v914_v63  ;;  %v947_v2 = vadd.f32 %v946_v11, %v869_v20  ;;  %v966_v6 = vadd.f32 %v965_v33, %v869_v20  ;;  %v1402_v20 = vpop.eup %1401 }
 0x225   : > { %v1404_v26 = vpop.eup %1403  ;;  %v1007_v27 = vadd.f32 1.0, %v991_v12  ;;  %v1008_v28 = vadd.f32 1.0, %v992_v38  ;;  %v1078_v11 = vunpack.c.h.bf16 %v1656_v46 }
 0x226   : > { %v1037_v7 = vunpack.c.l.bf16 %v1025_v5  ;;  %v987_v56 = vand.u32 2147450879, %v1665_v45  ;;  %v1038_v8 = vunpack.c.h.bf16 %v1025_v5  ;;  %v1669_v9 = vpack.c.bf16 %v966_v6, %v947_v2  ;;  %v1406_v29 = vpop.eup %1405 }
 0x227   : > { %v1408_v32 = vpop.eup %1407  ;;  %v1678_v42 = vpack.c.bf16 %v1008_v28, %v1007_v27  ;;  %v1061_v47 = vpack.c.bf16 %v1404_v26, %v1402_v20  ;;  %v1081_v25 = vunpack.c.l.bf16 %v1665_v45  ;;  %v1082_v6 = vunpack.c.h.bf16 %v1665_v45 }
 0x228   : > { %v1001_v17 = vunpack.c.l.bf16 %v987_v56  ;;  %v1002_v10 = vunpack.c.h.bf16 %v987_v56  ;;  %1409 = vrcp.f32 %v1037_v7  ;;  %v984_v13 = vand.u32 2147450879, %v1669_v9 }
 0x229   : > { %1411 = vrcp.f32 %v1038_v8  ;;  %v1063_v60 = vpack.c.bf16 %v1408_v32, %v1406_v29  ;;  %v1031_v61 = vunpack.c.l.bf16 %v1678_v42  ;;  %v1085_v33 = vunpack.c.l.bf16 %v1061_v47 }
 0x22a   : > { %v1017_v23 = vadd.f32 1.0, %v1001_v17  ;;  %v1018_v40 = vadd.f32 1.0, %v1002_v10  ;;  %v995_v35 = vunpack.c.l.bf16 %v984_v13  ;;  %v996_v36 = vunpack.c.h.bf16 %v984_v13 }
 0x22b   : > { %v949_v15 = vpop.f32.mrf.mxu2  ;;  %v968_v16 = vpop.f32.mrf.mxu3  ;;  %v1086_v5 = vunpack.c.h.bf16 %v1061_v47  ;;  %v1032_v17 = vunpack.c.h.bf16 %v1678_v42  ;;  %v1089_v12 = vunpack.c.l.bf16 %v1063_v60  ;;  %v1090_v13 = vunpack.c.h.bf16 %v1063_v60 }
 0x22c   : > { %v1027_v21 = vpack.c.bf16 %v1018_v40, %v1017_v23  ;;  %v950_v24 = vadd.f32 %v949_v15, %v1651_v4  ;;  %v969_v37 = vadd.f32 %v968_v16, %v1651_v4  ;;  %v1070_v4 = vunpack.c.h.bf16 %v1646_v19 }
 0x22d   : > { %v1011_v52 = vadd.f32 1.0, %v995_v35  ;;  %v1012_v53 = vadd.f32 1.0, %v996_v36  ;;  %v1105_v29 = vmul.f32 %v1089_v12, %v1073_v48  ;;  %v1106_v32 = vmul.f32 %v1090_v13, %v1074_v51  ;;  %v1125_v51 = vld [vmem:[%s1726_s6] sm:$0x1] }
 0x22e   : > { %v1041_v30 = vunpack.c.l.bf16 %v1027_v21  ;;  %v1042_v31 = vunpack.c.h.bf16 %v1027_v21  ;;  %v1674_v62 = vpack.c.bf16 %v969_v37, %v950_v24  ;;  %v1410_v18 = vpop.eup %1409 }
 0x22f   : > { %v1412_v57 = vpop.eup %1411  ;;  %v1024_v34 = vpack.c.bf16 %v1012_v53, %v1011_v52 }
 0x230   : > { %1413 = vrcp.f32 %v1041_v30  ;;  %v986_v39 = vand.u32 2147450879, %v1674_v62  ;;  %v1065_v55 = vpack.c.bf16 %v1412_v57, %v1410_v18  ;;  %v1101_v18 = vmul.f32 %v1085_v33, %v1069_v41 }
 0x231   : > { %1415 = vrcp.f32 %v1042_v31  ;;  %v1035_v15 = vunpack.c.l.bf16 %v1024_v34  ;;  %v1036_v45 = vunpack.c.h.bf16 %v1024_v34 }
 0x232   : > { %v999_v43 = vunpack.c.l.bf16 %v986_v39  ;;  %v1000_v44 = vunpack.c.h.bf16 %v986_v39  ;;  %v1093_v56 = vunpack.c.l.bf16 %v1065_v55  ;;  %v1094_v8 = vunpack.c.h.bf16 %v1065_v55 }
 0x233   : > { %v951_v50 = vpop.f32.mrf.mxu2  ;;  %v970_v54 = vpop.f32.mrf.mxu3  ;;  %1417 = vrcp.f32 %v1031_v61  ;;  %v1102_v39 = vmul.f32 %v1086_v5, %v1070_v4  ;;  %v1079_v61 = vunpack.c.l.bf16 %v1674_v62  ;;  %v1075_v5 = vunpack.c.l.bf16 %v1669_v9 }
 0x234   : > { %v1015_v22 = vadd.f32 1.0, %v999_v43  ;;  %v1016_v63 = vadd.f32 1.0, %v1000_v44  ;;  %v952_v0 = vadd.f32 %v951_v50, %v1659_v49  ;;  %v971_v1 = vadd.f32 %v970_v54, %v1659_v49 }
 0x235   : > { %v1109_v21 = vmul.f32 %v1093_v56, %v1077_v59  ;;  %v1110_v24 = vmul.f32 %v1094_v8, %v1078_v11  ;;  %v1117_v43 = vpack.c.bf16 %v1105_v29, %v1101_v18  ;;  %v1118_v44 = vpack.c.bf16 %v1106_v32, %v1102_v39 }
 0x236   : > { %v1414_v14 = vpop.eup %1413  ;;  %v1026_v3 = vpack.c.bf16 %v1016_v63, %v1015_v22  ;;  %v1690_v7 = vpack.c.bf16 %v971_v1, %v952_v0  ;;  %v1080_v63 = vunpack.c.h.bf16 %v1674_v62  ;;  %v1071_v62 = vunpack.c.l.bf16 %v1661_v58 }
 0x237   : > { %v1416_v2 = vpop.eup %1415 }
 0x238   : > { %v1067_v10 = vpack.c.bf16 %v1416_v2, %v1414_v14  ;;  %v1039_v49 = vunpack.c.l.bf16 %v1026_v3  ;;  %v988_v46 = vand.u32 2147450879, %v1690_v7  ;;  %v1040_v40 = vunpack.c.h.bf16 %v1026_v3 }
 0x239   : > { %v1418_v35 = vpop.eup %1417  ;;  %v1083_v0 = vunpack.c.l.bf16 %v1690_v7  ;;  %v1084_v1 = vunpack.c.h.bf16 %v1690_v7  ;;  %v1076_v2 = vunpack.c.h.bf16 %v1669_v9 }
 0x23a   : > { %v1097_v38 = vunpack.c.l.bf16 %v1067_v10  ;;  %v1098_v23 = vunpack.c.h.bf16 %v1067_v10  ;;  %v1003_v16 = vunpack.c.l.bf16 %v988_v46  ;;  %v1004_v20 = vunpack.c.h.bf16 %v988_v46 }
 0x23b   : > { %1419 = vrcp.f32 %v1039_v49  ;;  %v1072_v10 = vunpack.c.h.bf16 %v1661_v58 }
 0x23c   : > { %v1113_v37 = vmul.f32 %v1097_v38, %v1081_v25  ;;  %v1114_v26 = vmul.f32 %v1098_v23, %v1082_v6  ;;  %v1019_v27 = vadd.f32 1.0, %v1003_v16  ;;  %v1020_v28 = vadd.f32 1.0, %v1004_v20  ;;  %v1130_v16 = vpop.permute.xlu2 %1129 }
 0x23d   : > { %1421 = vrcp.f32 %v1040_v40  ;;  %v1132_v20 = vperm.slane %v1130_v16, 0 }
 0x23e   : > { %v1121_v30 = vpack.c.bf16 %v1113_v37, %v1109_v21  ;;  %v1122_v31 = vpack.c.bf16 %v1114_v26, %v1110_v24  ;;  %1423 = vrcp.f32 %v1035_v15  ;;  %v1028_v36 = vpack.c.bf16 %v1020_v28, %v1019_v27 }
 0x23f   : > { %1425 = vrcp.f32 %v1036_v45  ;;  %v1202_v26 = vlaneseq }
 0x240   : > { %1142 = vmatpush.bf16.msrb.mxu0 %v1121_v30  ;;  %1155 = vmatpush.bf16.msrb.mxu1 %v1122_v31  ;;  %1427 = vrcp.f32 %v1032_v17  ;;  %v1043_v57 = vunpack.c.l.bf16 %v1028_v36  ;;  %v1044_v42 = vunpack.c.h.bf16 %v1028_v36 }
 0x241   : > { %v1420_v47 = vpop.eup %1419  ;;  %vm1204_vm6 = vcmp.lt.s32.totalorder %v1202_v26, 512 }
 0x242   : > { %1429 = vrcp.f32 %v1043_v57 }
 0x243   : > { %v1422_v48 = vpop.eup %1421  ;;  %1431 = vrcp.f32 %v1044_v42 }
 0x244   : > { %1143 = vmatpush.bf16.msrb.mxu0 %v1117_v43  ;;  %1156 = vmatpush.bf16.msrb.mxu1 %v1118_v44  ;;  %v1424_v52 = vpop.eup %1423  ;;  %v1066_v19 = vpack.c.bf16 %v1422_v48, %v1420_v47 }
 0x245   : > { %v1426_v41 = vpop.eup %1425 }
 0x246   : > { %v1428_v53 = vpop.eup %1427  ;;  %v1064_v50 = vpack.c.bf16 %v1426_v41, %v1424_v52  ;;  %v1095_v59 = vunpack.c.l.bf16 %v1066_v19  ;;  %v1096_v22 = vunpack.c.h.bf16 %v1066_v19 }
 0x247   : > { %1313 = vmatmul.msk.bf16.vlgmr.msrb.gmra.mxu0 %vm618_vm2, %v1125_v51  ;;  %1314 = vmatmul.msk.bf16.vlgmr.msrb.gmra.mxu1 %vm618_vm2, %v1125_v51  ;;  %v1062_v55 = vpack.c.bf16 %v1428_v53, %v1418_v35 }
 0x248   : > { %v1430_v4 = vpop.eup %1429  ;;  %v1091_v25 = vunpack.c.l.bf16 %v1064_v50  ;;  %v1092_v33 = vunpack.c.h.bf16 %v1064_v50  ;;  %v1111_v3 = vmul.f32 %v1095_v59, %v1079_v61  ;;  %v1112_v56 = vmul.f32 %v1096_v22, %v1080_v63 }
 0x249   : > { %v1432_v54 = vpop.eup %1431  ;;  %v1087_v6 = vunpack.c.l.bf16 %v1062_v55  ;;  %v1088_v34 = vunpack.c.h.bf16 %v1062_v55 }
 0x24a   : > { %v1068_v60 = vpack.c.bf16 %v1432_v54, %v1430_v4  ;;  %v1107_v46 = vmul.f32 %v1091_v25, %v1075_v5  ;;  %v1108_v12 = vmul.f32 %v1092_v33, %v1076_v2 }
 0x24b   : > { %v1103_v38 = vmul.f32 %v1087_v6, %v1071_v62  ;;  %v1104_v23 = vmul.f32 %v1088_v34, %v1072_v10 }
 0x24c   : > { %v1099_v14 = vunpack.c.l.bf16 %v1068_v60  ;;  %v1100_v11 = vunpack.c.h.bf16 %v1068_v60 }
 0x24d   : > { %v1119_v40 = vpack.c.bf16 %v1107_v46, %v1103_v38  ;;  %v1120_v9 = vpack.c.bf16 %v1108_v12, %v1104_v23 }
 0x24e   : > { %v1115_v8 = vmul.f32 %v1099_v14, %v1083_v0  ;;  %v1116_v17 = vmul.f32 %v1100_v11, %v1084_v1 }
 0x250   : > { %v1123_v49 = vpack.c.bf16 %v1115_v8, %v1111_v3  ;;  %v1124_v7 = vpack.c.bf16 %v1116_v17, %v1112_v56 }
 0x252   : > { %1168 = vmatpush.bf16.msrb.mxu2 %v1123_v49  ;;  %1181 = vmatpush.bf16.msrb.mxu3 %v1124_v7 }
 0x256   : > { %1169 = vmatpush.bf16.msrb.mxu2 %v1119_v40  ;;  %1182 = vmatpush.bf16.msrb.mxu3 %v1120_v9 }
 0x259   : > { %1315 = vmatmul.msk.bf16.vlgmr.msrb.gmra.mxu2 %vm618_vm2, %v1125_v51  ;;  %1316 = vmatmul.msk.bf16.vlgmr.msrb.gmra.mxu3 %vm618_vm2, %v1125_v51 }
 0x2c4   : > { %v1145_v13 = vpop.f32.mrf.mxu0  ;;  %v1158_v15 = vpop.f32.mrf.mxu1 }
 0x2c5   : > { %v1159_v21 = vadd.f32 %v1158_v15, %v1132_v20  ;;  %v1146_v30 = vadd.f32 %v1145_v13, %v1132_v20 }
 0x2c7   : > { %v1192_v27 = vrot.slane %v1159_v21, 7 }
 0x2c9   : > { %v1196_v35 = vsel %vm1195_vm3, %v1146_v30, %v1192_v27 }
 0x2cc   : > { %v1147_v45 = vpop.f32.mrf.mxu0  ;;  %v1160_v58 = vpop.f32.mrf.mxu1 }
 0x2dc   : > { %v1171_v24 = vpop.f32.mrf.mxu2  ;;  %v1184_v37 = vpop.f32.mrf.mxu3 }
 0x2dd   : > { %v1172_v28 = vadd.f32 %v1171_v24, %v1132_v20  ;;  %v1185_v29 = vadd.f32 %v1184_v37, %v1132_v20 }
 0x2df   : > { %v1193_v31 = vrot.slane %v1172_v28, 6  ;;  %v1194_v32 = vrot.slane %v1185_v29, 5 }
 0x2e1   : > { %v1198_v36 = vsel %vm1197_vm4, %v1193_v31, %v1194_v32 }
 0x2e2   : > { %v1200_v18 = vsel %vm1199_vm5, %v1196_v35, %v1198_v36 }
 0x2e3   : > { %1206 = vst.msk [vmem:[%s307_s24] sm:$0xf] %vm1204_vm6, %v1200_v18 }
 0x2e4   : > { %v1173_v39 = vpop.f32.mrf.mxu2  ;;  %v1186_v57 = vpop.f32.mrf.mxu3 }
 0x2e5 PF: > { %s20_s29 = sadd.s32 1, %s1439_s29  }
 0x2e6   : > { %p17_p4 = scmp.ge.s32.totalorder %s20_s29, 4  }
 0x2e8   :  { %19 = sbr.rel (!%p17_p4) target bundleno = 3 (0x3), region = 82 }

</bundles_post_ra>
